<compile_context>
chip_gen: v5e
topology: v5e:2x2
jax: 0.10.0
libtpu: 0.0.40
codegen_flags: <defaults>
</compile_context>

<pallas_src>
import jax
import jax.numpy as jnp
from jax.experimental import pallas as pl
from jax.experimental.pallas import tpu as pltpu


def _downsample_kernel(x_ref, w_ref, scale_ref, shift_ref, o_ref):
    # x_ref:     (1, Cin, HWT)   bf16  one sample's tile of strided spatial positions
    # w_ref:     (Cout, Cin)     bf16  1x1 conv weight
    # scale_ref: (1, Cout, 1)    f32   per-sample BN scale  = gamma / sqrt(var + eps)
    # shift_ref: (1, Cout, 1)    f32   per-sample BN shift  = beta - mean * scale
    # o_ref:     (1, Cout, HWT)  f32   lane-dense output (HW on the lane axis)
    y = jnp.dot(w_ref[...], x_ref[0], preferred_element_type=jnp.float32)   # MXU
    o_ref[0] = (y * scale_ref[0] + shift_ref[0]).astype(o_ref.dtype)        # f32 VPU epilogue


def downsample_forward(x_nchw, flags_onehot, params, stride, eps=1e-5,
                       compute_dtype=jnp.bfloat16):
    """x_nchw: [N, Cin, H, W], flags_onehot: [N, ntasks] (exact one-hot, float)."""
    w_conv = params["conv_weight"]          # [Cout, Cin, 1, 1]
    gamma = params["bn_weight"]             # [ntasks, Cout]
    beta = params["bn_bias"]                # [ntasks, Cout]
    r_mean = params["bn_running_mean"]      # [ntasks, Cout]
    r_var = params["bn_running_var"]        # [ntasks, Cout]

    N, Cin, H, W = x_nchw.shape
    Cout = w_conv.shape[0]

    # Strided 1x1-conv spatial subsample, kept NCHW-native: [N, Cin, Ho*Wo].
    # slice + minor-dim reshape + bf16 cast fuse into a single XLA pass (no transpose).
    # TODO(synk): fuse this strided gather into the kernel DMA (element-offset index_map
    # on H + strided lane slice on W) to drop the remaining HBM round trip.
    x_sub = x_nchw[:, :, ::stride, ::stride]             # [N, Cin, Ho, Wo]
    Ho, Wo = x_sub.shape[2], x_sub.shape[3]
    HW = Ho * Wo
    x_flat = x_sub.reshape(N, Cin, HW).astype(compute_dtype)

    # Lane-dense HW tiling: tiles are multiples of 128 lanes (512 when HW is large so
    # the pipeline has work per step); for tiny HW use a single full-dim block.
    if HW >= 512:
        hw_tile = 512
    elif HW >= 128:
        hw_tile = 128
    else:
        hw_tile = HW
    n_tiles = pl.cdiv(HW, hw_tile)
    hw_pad = n_tiles * hw_tile
    if hw_pad != HW:
        x_flat = jnp.pad(x_flat, ((0, 0), (0, 0), (0, hw_pad - HW)))

    # Per-sample BN params via one-hot flags (tiny matmuls), folded to scale/shift.
    mean_n = flags_onehot @ r_mean                       # [N, Cout]
    var_n = flags_onehot @ r_var
    gamma_n = flags_onehot @ gamma
    beta_n = flags_onehot @ beta
    scale_n = (gamma_n * jax.lax.rsqrt(var_n + eps)).astype(jnp.float32)
    shift_n = (beta_n - mean_n * scale_n).astype(jnp.float32)
    scale_n = scale_n[:, :, None]                        # [N, Cout, 1] -> lane broadcast
    shift_n = shift_n[:, :, None]

    w_mat = w_conv[:, :, 0, 0].astype(compute_dtype)     # [Cout, Cin]

    # Explicit VMEM budget: double-buffered x/out tiles + resident weight + scale/shift.
    x_bytes = jnp.dtype(compute_dtype).itemsize
    per_step = (2 * hw_tile * (Cin * x_bytes + Cout * 4)
                + Cout * Cin * x_bytes + 4 * Cout * 4)
    vmem_limit = int(min(max(4 * per_step, 16 * 1024 * 1024), 64 * 1024 * 1024))

    out_flat = pl.pallas_call(
        _downsample_kernel,
        out_shape=jax.ShapeDtypeStruct((N, Cout, hw_pad), jnp.float32),
        grid=(N, n_tiles),
        in_specs=[
            pl.BlockSpec((1, Cin, hw_tile), lambda n, t: (n, 0, t)),
            pl.BlockSpec((Cout, Cin), lambda n, t: (0, 0)),       # resident across grid
            pl.BlockSpec((1, Cout, 1), lambda n, t: (n, 0, 0)),   # resident across HW tiles
            pl.BlockSpec((1, Cout, 1), lambda n, t: (n, 0, 0)),
        ],
        out_specs=pl.BlockSpec((1, Cout, hw_tile), lambda n, t: (n, 0, t)),
        compiler_params=pltpu.CompilerParams(
            dimension_semantics=("parallel", "parallel"),
            vmem_limit_bytes=vmem_limit,
        ),
    )(x_flat, w_mat, scale_n, shift_n)

    # Drop HW padding and split Ho*Wo back out (minor-dim reshape -> no transpose/copy).
    out = out_flat[:, :, :HW].reshape(N, Cout, Ho, Wo)
    return out


def init_params(key, inplanes, planes, expansion, ntasks):
    cout = planes * expansion
    k1, k2, k3, k4, k5 = jax.random.split(key, 5)
    conv_weight = jax.random.normal(k1, (cout, inplanes, 1, 1), jnp.float32) * 0.1
    bn_weight = 1.0 + 0.05 * jax.random.normal(k2, (ntasks, cout), jnp.float32)
    bn_bias = 0.05 * jax.random.normal(k3, (ntasks, cout), jnp.float32)
    bn_running_mean = 0.1 * jax.random.normal(k4, (ntasks, cout), jnp.float32)
    bn_running_var = 1.0 + 0.1 * jax.random.uniform(k5, (ntasks, cout), jnp.float32)
    return {
        "conv_weight": conv_weight,
        "bn_weight": bn_weight,
        "bn_bias": bn_bias,
        "bn_running_mean": bn_running_mean,
        "bn_running_var": bn_running_var,
    }


def reference_forward(x_nchw, flags_onehot, params, stride, eps=1e-5,
                      compute_dtype=jnp.float32):
    # pure-JAX reference (strided 1x1 conv + per-task eval-mode BN); compute_dtype
    # optionally rounds conv inputs the same way the kernel does (bf16).
    w = params["conv_weight"][:, :, 0, 0].astype(compute_dtype).astype(jnp.float32)
    x_sub = x_nchw[:, :, ::stride, ::stride].astype(compute_dtype).astype(jnp.float32)
    y = jnp.einsum("oc,nchw->nohw", w, x_sub)
    mean_n = flags_onehot @ params["bn_running_mean"]
    var_n = flags_onehot @ params["bn_running_var"]
    gamma_n = flags_onehot @ params["bn_weight"]
    beta_n = flags_onehot @ params["bn_bias"]
    y = (y - mean_n[:, :, None, None]) / jnp.sqrt(var_n[:, :, None, None] + eps)
    return y * gamma_n[:, :, None, None] + beta_n[:, :, None, None]


if __name__ == "__main__":
    key = jax.random.PRNGKey(0)
    k_x, k_p, k_f = jax.random.split(key, 3)

    # small shapes consistent with the module
    N, inplanes, H, W = 2, 4, 16, 16
    planes, expansion, stride, ntasks = 4, 2, 2, 3

    x = jax.random.normal(k_x, (N, inplanes, H, W), jnp.float32)
    task_ids = jax.random.randint(k_f, (N,), 0, ntasks)
    flags = jax.nn.one_hot(task_ids, ntasks, dtype=jnp.float32)  # [N, ntasks]

    params = init_params(k_p, inplanes, planes, expansion, ntasks)

    out = downsample_forward(x, flags, params, stride)
    out = jax.block_until_ready(out)
    assert out.shape == (N, planes * expansion, H // stride, W // stride)

    # Apples-to-apples: reference with identical bf16-rounded conv inputs, f32 math.
    ref_bf16 = reference_forward(x, flags, params, stride, compute_dtype=jnp.bfloat16)
    assert jnp.allclose(out, ref_bf16, atol=1e-4, rtol=1e-4)

    # Against the full-f32 torch-equivalent reference (bf16 input-rounding tolerance).
    ref_f32 = reference_forward(x, flags, params, stride)
    assert jnp.allclose(out, ref_f32, atol=3e-2, rtol=3e-2)

    print("KERNEL_OK")
</pallas_src>

<mosaic_0001>
module attributes {stable_mosaic.version = 11 : i64} {
  func.func @_downsample_kernel(%arg0: i32, %arg1: i32, %arg2: memref<1x4x64xbf16, #tpu.memory_space<vmem>>, %arg3: memref<8x4xbf16, #tpu.memory_space<vmem>>, %arg4: memref<1x8x1xf32, #tpu.memory_space<vmem>>, %arg5: memref<1x8x1xf32, #tpu.memory_space<vmem>>, %arg6: memref<1x8x64xf32, #tpu.memory_space<vmem>>) attributes {dimension_semantics = [#tpu.dimension_semantics<parallel>, #tpu.dimension_semantics<parallel>], iteration_bounds = array<i64: 2, 1>, scalar_prefetch = 0 : i64, scratch_operands = 0 : i64, tpu.core_type = #tpu.core_type<tc>, window_params = [{transform_indices = @transform_0, window_bounds = array<i64: 1, 4, 64>}, {pipeline_mode = #tpu.pipeline_mode<synchronous>, transform_indices = @transform_1, window_bounds = array<i64: 8, 4>}, {transform_indices = @transform_2, window_bounds = array<i64: 1, 8, 1>}, {transform_indices = @transform_3, window_bounds = array<i64: 1, 8, 1>}, {transform_indices = @transform_4, window_bounds = array<i64: 1, 8, 64>}]} {
    %c0 = arith.constant 0 : index
    %c0_0 = arith.constant 0 : index
    %0 = vector.load %arg3[%c0, %c0_0] : memref<8x4xbf16, #tpu.memory_space<vmem>>, vector<8x4xbf16>
    %c0_1 = arith.constant 0 : index
    %c0_2 = arith.constant 0 : index
    %c0_3 = arith.constant 0 : index
    %1 = vector.load %arg2[%c0_1, %c0_2, %c0_3] : memref<1x4x64xbf16, #tpu.memory_space<vmem>>, vector<1x4x64xbf16>
    %2 = vector.shape_cast %1 : vector<1x4x64xbf16> to vector<4x64xbf16>
    %cst = arith.constant dense<0.000000e+00> : vector<8x64xf32>
    %3 = tpu.matmul %0, %2, %cst {dimension_numbers = #tpu.dot_dimension_numbers<[1], [0], [0], [1], [0, 0, 1, 1], [], []>} : vector<8x4xbf16>, vector<4x64xbf16>, vector<8x64xf32> -> vector<8x64xf32>
    %c0_4 = arith.constant 0 : index
    %c0_5 = arith.constant 0 : index
    %c0_6 = arith.constant 0 : index
    %4 = vector.load %arg4[%c0_4, %c0_5, %c0_6] : memref<1x8x1xf32, #tpu.memory_space<vmem>>, vector<1x8x1xf32>
    %5 = vector.shape_cast %4 : vector<1x8x1xf32> to vector<8x1xf32>
    %6 = vector.broadcast %5 : vector<8x1xf32> to vector<8x64xf32>
    %7 = arith.mulf %3, %6 : vector<8x64xf32>
    %c0_7 = arith.constant 0 : index
    %c0_8 = arith.constant 0 : index
    %c0_9 = arith.constant 0 : index
    %8 = vector.load %arg5[%c0_7, %c0_8, %c0_9] : memref<1x8x1xf32, #tpu.memory_space<vmem>>, vector<1x8x1xf32>
    %9 = vector.shape_cast %8 : vector<1x8x1xf32> to vector<8x1xf32>
    %10 = vector.broadcast %9 : vector<8x1xf32> to vector<8x64xf32>
    %11 = arith.addf %7, %10 : vector<8x64xf32>
    %c0_10 = arith.constant 0 : index
    %c0_11 = arith.constant 0 : index
    %c0_12 = arith.constant 0 : index
    %12 = vector.load %arg6[%c0_10, %c0_11, %c0_12] : memref<1x8x64xf32, #tpu.memory_space<vmem>>, vector<1x8x64xf32>
    %13 = vector.shape_cast %12 : vector<1x8x64xf32> to vector<8x64xf32>
    %14 = vector.shape_cast %11 : vector<8x64xf32> to vector<1x8x64xf32>
    tpu.vector_store %arg6[%c0_10, %c0_11, %c0_12], %14 {strides = array<i32>} : memref<1x8x64xf32, #tpu.memory_space<vmem>>, vector<1x8x64xf32>,
    return
  }
  func.func @transform_0(%arg0: i32, %arg1: i32) -> (i32, i32, i32) {
    %c0_i32 = arith.constant 0 : i32
    %c0_i32_0 = arith.constant 0 : i32
    return %arg0, %c0_i32, %arg1 : i32, i32, i32
  }
  func.func @transform_1(%arg0: i32, %arg1: i32) -> (i32, i32) {
    %c0_i32 = arith.constant 0 : i32
    %c0_i32_0 = arith.constant 0 : i32
    %c0_i32_1 = arith.constant 0 : i32
    return %c0_i32, %c0_i32_0 : i32, i32
  }
  func.func @transform_2(%arg0: i32, %arg1: i32) -> (i32, i32, i32) {
    %c0_i32 = arith.constant 0 : i32
    %c0_i32_0 = arith.constant 0 : i32
    %c0_i32_1 = arith.constant 0 : i32
    return %arg0, %c0_i32, %c0_i32_0 : i32, i32, i32
  }
  func.func @transform_3(%arg0: i32, %arg1: i32) -> (i32, i32, i32) {
    %c0_i32 = arith.constant 0 : i32
    %c0_i32_0 = arith.constant 0 : i32
    %c0_i32_1 = arith.constant 0 : i32
    return %arg0, %c0_i32, %c0_i32_0 : i32, i32, i32
  }
  func.func @transform_4(%arg0: i32, %arg1: i32) -> (i32, i32, i32) {
    %c0_i32 = arith.constant 0 : i32
    %c0_i32_0 = arith.constant 0 : i32
    return %arg0, %c0_i32, %arg1 : i32, i32, i32
  }
}

</mosaic_0001>

<bundles_post_ra>
// kernel: tpu_custom_call.1
= control target key start
LH: loop header
LB: loop body
LE: loop exit
PB: predicated region body
PF: predicated region fallthrough
CT: control target
= control target key end

     0   :  { %9 = vsyncpa [#allocation3], 0  ;;  %s687_s0 = inlined_call_operand.vmem [shape: bf16[2,4,64], index: 0, kind: input, shape index: {}]   ;;  %s688_s1 = inlined_call_operand.vmem [shape: bf16[8,4], index: 1, kind: input, shape index: {}]   ;;  %s689_s2 = inlined_call_operand.vmem [shape: f32[2,8,1], index: 2, kind: input, shape index: {}]   ;;  %s690_s3 = inlined_call_operand.vmem [shape: f32[2,8,1], index: 3, kind: input, shape index: {}]   ;;  %s691_s4 = inlined_call_operand.hbm [shape: f32[2,8,64], index: 4, kind: output, shape index: {}]  }
   0x1   :  { %11 = vsyncpa [#allocation3 + $0x1], 0  ;;  %s581_s15 = smov 0   ;;  %s583_s16 = smov 0  }
   0x2   :  { %s585_s17 = smov 0   ;;  %s587_s18 = smov 0  }
   0x3   :  { %s589_s19 = smov 0   ;;  %s591_s20 = smov 0  }
   0x4 LB: > { %s404_s21 = sadd.s32 4294967295, %s553_s20   ;;  %s405_s22 = sadd.s32 4294967294, %s553_s20   ;;  %s553_s20 = sphi %s591_s20, %s17_s20   ;;  %s549_s19 = sphi %s589_s19, %s698_s19   ;;  %s545_s18 = sphi %s587_s18, %s697_s18   ;;  %s541_s17 = sphi %s585_s17, %s696_s17   ;;  %s537_s16 = sphi %s583_s16, %s695_s16   ;;  %s533_s15 = sphi %s581_s15, %s694_s15  }
   0x5   : > { %s29_s23 = sadd.s32 1, %s549_s19  ;;  %s139_s24 = sadd.s32 1, %s541_s17 }
   0x6   : > { %p31_p0 = scmp.ge.s32.totalorder %s29_s23, 2  ;;  %p149_p1 = scmp.ne.s32.totalorder %s541_s17, %s537_s16 }
   0x7   : > { %p150_p2 = scmp.eq.s32.totalorder %s404_s21, 1  ;;  %p155_p3 = scmp.ne.s32.totalorder %s537_s16, %s533_s15 }
   0x8   : > { %s700_s23 = smov (%p31_p0, %s29_s23), 0  ;;  %p156_p5 = scmp.eq.s32.totalorder %s405_s22, 1 }
   0x9   : > { %p621_p4 = por %p150_p2, %p149_p1  ;;  %s134_s26 = ssub.s32 %s549_s19, %s700_s23 }
   0xa   : > { %p408_p6 = scmp.ge.s32.totalorder %s553_s20, 1  ;;  %p137_p7 = scmp.eq.s32.totalorder %s134_s26, 0 }
   0xb   : > { %p628_p8 = por %p156_p5, %p155_p3  ;;  %p201_p9 = scmp.lt.s32.totalorder %s553_s20, 3 }
   0xc   : > { %s634_s28 = scalar_select %p137_p7, %s541_s17, %s139_s24  }
   0xd   : > { %p202_p10 = pnand %p408_p6, %p201_p9 }
   0xe   : > { %p237_p11 = scmp.lt.s32.totalorder (!%p202_p10), %s545_s18, 1  ;;  %s234_s24 = sand.u32 (!%p202_p10), 1, %s537_s16  }
   0xf   : > { %205 = sbr.rel (%p202_p10) target bundleno = 163 (0xa3), region = 36  ;;  %s409_s26 = sshll.u32 (!%p202_p10), %s234_s24, 3 }
  0x10   : > { %s495_s14 = scalar_lea.hbm (!%p202_p10), %s691_s4, 16 }
  0x14   : > { %v555_v0 = vmov 0   ;;  %s238_s29 = scalar_select %p237_p11, %s545_s18, 1  ;;  %vm259_vm0 = vcmask 1041408   ;;  %v253_v4 = vld [vmem:[%s688_s1] sm:$0xf]  ;;  %vm255_vm1 = vcmask 31744  }
  0x15   : > { %474 = vset.pattern.permute.xlu0 %v555_v0  ;;  %vm290_vm2 = vcmask 523264  }
  0x16   : > { %s410_s30 = sshll.u32 %s238_s29, 1  ;;  %s411_s5 = sshll.u32 %s238_s29, 3 }
  0x17   : > { %s243_s8 = scalar_lea.vmem %s687_s0, %s410_s30  ;;  %s247_s11 = scalar_lea.vmem %s689_s2, %s411_s5 }
  0x18   : > { %v254_v1 = vld [vmem:[%s243_s8] sm:$0x3]  ;;  %s251_s22 = scalar_lea.vmem %s690_s3, %s411_s5  ;;  %s415_s29 = sshll.u32 %s545_s18, 3 }
  0x19   : > { %v276_v2 = vld [vmem:[%s247_s11] sm:$0xff]  ;;  %v261_v3 = vsel %vm259_vm0, %v254_v1, 0  ;;  %s304_s7 = scalar_lea.hbm %s691_s4, %s415_s29  ;;  %s236_s8 = scalar_lea.vmem [#allocation2], %s409_s26 }
  0x1a   : > { %279 = vperm.xlu0 %474, %v276_v2   ;;  %270 = vmatpush.bf16.msra.mxu0 %v261_v3  ;;  %v283_v5 = vld [vmem:[%s251_s22] sm:$0xff]  ;;  %s306_s9 = sshll.u32 %s236_s8, 4  ;;  %s308_s10 = sshll.u32 %s304_s7, 4  ;;  %s307_s9 = int_to_ptr.vmem [resolvable:$true] %s306_s9  ;;  %s309_s10 = int_to_ptr.hbm [resolvable:$true] %s308_s10 }
  0x1b   : > { %s293_s5 = scalar_lea.sflag [#allocation3], %s234_s24  ;;  %s489_s11 = sshra.s32 %s309_s10, 4  ;;  %s490_s11 = int_to_ptr.hbm [resolvable:$true] %s489_s11 }
  0x1c   : > { %s491_s18 = scalar_lea.hbm %s490_s11, 8  ;;  %p496_p1 = scmp.lt.s32.totalorder %s490_s11, %s691_s4 }
  0x1d   : > { %413 = vmatmul.msk.bf16.vlgmr.msra.gmra.mxu0 %vm255_vm1, %v253_v4  ;;  %p492_p12 = scmp.ne.s32.totalorder %s490_s11, %s491_s18  ;;  %p497_p2 = scmp.lt.s32.totalorder %s495_s14, %s491_s18 }
  0x1f   : > { %p493_p13 = pnand %p492_p12, %p621_p4  ;;  %p498_p3 = por %p497_p2, %p496_p1 }
  0x21   : > { %p494_p0 = pneg %p493_p13 }
  0x22   : > { %286 = vperm.xlu0 %474, %v283_v5  }
  0x23   : > { %p499_p5 = pnand %p498_p3, %p494_p0 }
  0x8c   : > { %v280_v6 = vpop.permute.xlu0 %279 }
  0x94   : > { %v287_v9 = vpop.permute.xlu0 %286 }
  0x9a   : > { %v272_v7 = vpop.f32.mrf.mxu0 }
  0x9b   : > { %v282_v8 = vmul.f32 %v280_v6, %v272_v7 }
  0x9d   : > { %v289_v10 = vadd.f32 %v287_v9, %v282_v8 }
  0x9f   : > { %291 = vst.msk [vmem:[%s236_s8] sm:$0xff] %vm290_vm2, %v289_v10 }
  0xa0   : > { %502 = shalt.err (!%p499_p5)
}
  0xa1   : > { %418 = dma.vmem_to_hbm [thread:$0]  (%p621_p4), %s307_s9, 128, %s309_s10, %s293_s5  }
  0xa2   : > { %v274_v11 = vpop.f32.mrf.mxu0 }
  0xa3 PF: > { %p424_p6 = scmp.ge.s32.totalorder %s553_s20, 2  ;;  %s320_s24 = sand.u32 1, %s533_s15  }
  0xa4   : > { %s321_s26 = scalar_lea.sflag [#allocation3], %s320_s24 }
  0xa5   : > { %p421_p7 = pnand %p424_p6, %p628_p8 }
  0xa7   : > { %p422_p9 = pneg %p421_p7 }
  0xa9   : > { %528 = dma.done.wait (%p422_p9), %s321_s26, 128  }
  0xaa   : > { %530 = vsyncadd (%p422_p9), %s321_s26, 4294967168  ;;  %s17_s20 = sadd.s32 1, %s553_s20   ;;  %s694_s15 = smov %s537_s16 }
  0xab   : > { %p14_p10 = scmp.ge.s32.totalorder %s17_s20, 4   ;;  %s695_s16 = smov %s541_s17 }
  0xac   : > { %s696_s17 = smov %s634_s28  ;;  %s697_s18 = smov %s549_s19 }
  0xad   : > { %s698_s19 = smov %s700_s23  ;;  %16 = sbr.rel (!%p14_p10) target bundleno = 4 (0x4), region = 77 }
  0xb2   :  { %327 = vsyncpa [#allocation3], 1 }
  0xb3   :  { %329 = vsyncpa [#allocation3 + $0x1], 1 }

</bundles_post_ra>
